<compile_context>
chip_gen: v6e
topology: v6e:2x2x1
jax: 0.10.0
libtpu: 0.0.40
codegen_flags: <defaults>
</compile_context>

<pallas_src>
import functools

import jax
import jax.numpy as jnp
from jax import lax
from jax.experimental import pallas as pl
from jax.experimental.pallas import tpu as pltpu


def _attention_lstm_kernel(support_ref, queries_ref, w_ih_ref, w_hh_ref,
                           b_ref, out_ref, *, unrolling_steps, mxu_dtype):
    support = support_ref[...]                    # (S, D)  f32
    q = queries_ref[...]                          # (tb, D) f32
    w_ih = w_ih_ref[...]                          # (4D, D) torch layout
    w_hh = w_hh_ref[...]                          # (4D, D) torch layout
    b = b_ref[...]                                # (1, 4D) combined bias

    D = q.shape[-1]

    # Optional bf16 MXU feed (no-op casts when mxu_dtype == f32).
    support_m = support.astype(mxu_dtype)
    w_ih_m = w_ih.astype(mxu_dtype)
    w_hh_m = w_hh.astype(mxu_dtype)

    # Loop-invariant input projection: ONE fused lane-dense (tb, 4D) matmul,
    # contracting the last dims (x @ W_ih^T in torch terms), plus the bias.
    gq = lax.dot_general(q.astype(mxu_dtype), w_ih_m, (((1,), (1,)), ((), ())),
                         preferred_element_type=jnp.float32) + b     # (tb, 4D)

    h_hat = jnp.zeros_like(q)
    c = jnp.zeros_like(q)

    # unrolling_steps is a small static constant -> unrolled Python loop.
    # TODO(synk): switch to lax.fori_loop carrying (h_hat, c) if unrolling_steps
    # grows beyond ~8 (full unrolling does not bound vreg live ranges).
    for _ in range(unrolling_steps):
        h = h_hat + q                                                 # skip connection
        # Attention over the support set: softmax(h @ support^T, dim=1),
        # computed without materializing support^T (contract last dims).
        att = lax.dot_general(h.astype(mxu_dtype), support_m,
                              (((1,), (1,)), ((), ())),
                              preferred_element_type=jnp.float32)     # (tb, S)
        att_max = jnp.max(att, axis=1, keepdims=True)
        p = jnp.exp(att - att_max)
        att = p / jnp.sum(p, axis=1, keepdims=True)                   # exact softmax
        readout = jnp.dot(att.astype(mxu_dtype), support_m,
                          preferred_element_type=jnp.float32)         # (tb, D)

        # nn.LSTMCell(queries, (h + readout, c)); gate order [i, f, g, o].
        hx = h + readout
        gates = gq + lax.dot_general(hx.astype(mxu_dtype), w_hh_m,
                                     (((1,), (1,)), ((), ())),
                                     preferred_element_type=jnp.float32)  # (tb, 4D)
        i_g = jax.nn.sigmoid(gates[:, 0 * D:1 * D])
        f_g = jax.nn.sigmoid(gates[:, 1 * D:2 * D])
        g_g = jnp.tanh(gates[:, 2 * D:3 * D])
        o_g = jax.nn.sigmoid(gates[:, 3 * D:4 * D])
        c = f_g * c + i_g * g_g
        h_hat = o_g * jnp.tanh(c)

    out_ref[...] = h_hat + q


def attention_lstm_forward(support, queries, w_ih, w_hh, b_ih, b_hh,
                           unrolling_steps, *, tile_b=512, use_bf16_mxu=False):
    """support: (S, D) f32, queries: (B, D) f32.
    w_ih, w_hh: (4D, D) f32 (torch.nn.LSTMCell layout); b_ih, b_hh: (4D,)."""
    support = jnp.asarray(support, jnp.float32)
    queries = jnp.asarray(queries, jnp.float32)
    S, D = support.shape
    B = queries.shape[0]

    w_ih = jnp.asarray(w_ih, jnp.float32)                       # (4D, D), native layout
    w_hh = jnp.asarray(w_hh, jnp.float32)                       # (4D, D), native layout
    b = (jnp.asarray(b_ih, jnp.float32)
         + jnp.asarray(b_hh, jnp.float32)).reshape(1, 4 * D)    # (1, 4D)

    # Tile the query batch. Per-tile VMEM is tiny (tb*D*4 B), so use a large
    # tile; B > tile_b guarantees >=2 grid steps (shards over v7x TensorCores).
    if B > tile_b:
        tb = tile_b
        pad = (-B) % tb
    else:
        tb = B
        pad = 0
    q_pad = jnp.pad(queries, ((0, pad), (0, 0))) if pad else queries
    bp = B + pad

    kernel = functools.partial(
        _attention_lstm_kernel,
        unrolling_steps=unrolling_steps,
        mxu_dtype=jnp.bfloat16 if use_bf16_mxu else jnp.float32)

    out = pl.pallas_call(
        kernel,
        out_shape=jax.ShapeDtypeStruct((bp, D), jnp.float32),
        grid=(bp // tb,),
        in_specs=[
            pl.BlockSpec((S, D), lambda i: (0, 0)),          # support (resident)
            pl.BlockSpec((tb, D), lambda i: (i, 0)),         # query tile
            pl.BlockSpec((4 * D, D), lambda i: (0, 0)),      # W_ih (resident, native)
            pl.BlockSpec((4 * D, D), lambda i: (0, 0)),      # W_hh (resident, native)
            pl.BlockSpec((1, 4 * D), lambda i: (0, 0)),      # combined bias (resident)
        ],
        out_specs=pl.BlockSpec((tb, D), lambda i: (i, 0)),
        compiler_params=pltpu.CompilerParams(
            dimension_semantics=("parallel",)),
    )(support, q_pad, w_ih, w_hh, b)
    return out[:B]


def _reference(support, queries, w_ih, w_hh, b_ih, b_hh, unrolling_steps):
    """Pure-JAX replica of the PyTorch forward for verification."""
    D = queries.shape[1]
    h_hat = jnp.zeros_like(queries)
    c = jnp.zeros_like(queries)
    for _ in range(unrolling_steps):
        h = h_hat + queries
        att = jax.nn.softmax(h @ support.T, axis=1)
        readout = att @ support
        hx = h + readout
        gates = queries @ w_ih.T + b_ih + hx @ w_hh.T + b_hh
        i_g = jax.nn.sigmoid(gates[:, 0 * D:1 * D])
        f_g = jax.nn.sigmoid(gates[:, 1 * D:2 * D])
        g_g = jnp.tanh(gates[:, 2 * D:3 * D])
        o_g = jax.nn.sigmoid(gates[:, 3 * D:4 * D])
        c = f_g * c + i_g * g_g
        h_hat = o_g * jnp.tanh(c)
    return h_hat + queries


if __name__ == "__main__":
    SIZE = 32            # embedding / hidden dim (constrained equal in module)
    N_SUPPORT = 16       # support set size
    BATCH = 8            # query set size
    UNROLLING_STEPS = 2

    key = jax.random.PRNGKey(0)
    ks, kq, k1, k2, k3, k4 = jax.random.split(key, 6)

    support = jax.random.normal(ks, (N_SUPPORT, SIZE), jnp.float32)
    queries = jax.random.normal(kq, (BATCH, SIZE), jnp.float32)

    # LSTMCell params (torch default: U(-1/sqrt(hidden), 1/sqrt(hidden))).
    bound = 1.0 / jnp.sqrt(jnp.float32(SIZE))
    w_ih = jax.random.uniform(k1, (4 * SIZE, SIZE), jnp.float32, -bound, bound)
    w_hh = jax.random.uniform(k2, (4 * SIZE, SIZE), jnp.float32, -bound, bound)
    b_ih = jax.random.uniform(k3, (4 * SIZE,), jnp.float32, -bound, bound)
    b_hh = jax.random.uniform(k4, (4 * SIZE,), jnp.float32, -bound, bound)

    out = attention_lstm_forward(support, queries, w_ih, w_hh, b_ih, b_hh,
                                 UNROLLING_STEPS)
    out = jax.block_until_ready(out)

    ref = _reference(support, queries, w_ih, w_hh, b_ih, b_hh, UNROLLING_STEPS)
    assert out.shape == (BATCH, SIZE)
    # Exact (non-approx) softmax reciprocal and f32 MXU feed -> tight tolerance.
    assert jnp.allclose(out, ref, atol=1e-4, rtol=1e-4), (
        float(jnp.max(jnp.abs(out - ref))))

    print("KERNEL_OK")
</pallas_src>

<mosaic_0001>
module attributes {stable_mosaic.version = 11 : i64} {
  func.func @_attention_lstm_kernel(%arg0: i32, %arg1: memref<16x32xf32, #tpu.memory_space<vmem>>, %arg2: memref<8x32xf32, #tpu.memory_space<vmem>>, %arg3: memref<128x32xf32, #tpu.memory_space<vmem>>, %arg4: memref<128x32xf32, #tpu.memory_space<vmem>>, %arg5: memref<1x128xf32, #tpu.memory_space<vmem>>, %arg6: memref<8x32xf32, #tpu.memory_space<vmem>>) attributes {dimension_semantics = [#tpu.dimension_semantics<parallel>], iteration_bounds = array<i64: 1>, scalar_prefetch = 0 : i64, scratch_operands = 0 : i64, tpu.core_type = #tpu.core_type<tc>, window_params = [{pipeline_mode = #tpu.pipeline_mode<synchronous>, transform_indices = @transform_0, window_bounds = array<i64: 16, 32>}, {transform_indices = @transform_1, window_bounds = array<i64: 8, 32>}, {pipeline_mode = #tpu.pipeline_mode<synchronous>, transform_indices = @transform_2, window_bounds = array<i64: 128, 32>}, {pipeline_mode = #tpu.pipeline_mode<synchronous>, transform_indices = @transform_3, window_bounds = array<i64: 128, 32>}, {pipeline_mode = #tpu.pipeline_mode<synchronous>, transform_indices = @transform_4, window_bounds = array<i64: 1, 128>}, {transform_indices = @transform_5, window_bounds = array<i64: 8, 32>}]} {
    %c0 = arith.constant 0 : index
    %c0_0 = arith.constant 0 : index
    %0 = vector.load %arg1[%c0, %c0_0] : memref<16x32xf32, #tpu.memory_space<vmem>>, vector<16x32xf32>
    %c0_1 = arith.constant 0 : index
    %c0_2 = arith.constant 0 : index
    %1 = vector.load %arg2[%c0_1, %c0_2] : memref<8x32xf32, #tpu.memory_space<vmem>>, vector<8x32xf32>
    %c0_3 = arith.constant 0 : index
    %c0_4 = arith.constant 0 : index
    %2 = vector.load %arg3[%c0_3, %c0_4] : memref<128x32xf32, #tpu.memory_space<vmem>>, vector<128x32xf32>
    %c0_5 = arith.constant 0 : index
    %c0_6 = arith.constant 0 : index
    %3 = vector.load %arg4[%c0_5, %c0_6] : memref<128x32xf32, #tpu.memory_space<vmem>>, vector<128x32xf32>
    %c0_7 = arith.constant 0 : index
    %c0_8 = arith.constant 0 : index
    %4 = vector.load %arg5[%c0_7, %c0_8] : memref<1x128xf32, #tpu.memory_space<vmem>>, vector<1x128xf32>
    %cst = arith.constant dense<0.000000e+00> : vector<8x128xf32>
    %5 = tpu.matmul %1, %2, %cst {dimension_numbers = #tpu.dot_dimension_numbers<[1], [1], [0], [0], [0, 0, 1, 0], [], []>} : vector<8x32xf32>, vector<128x32xf32>, vector<8x128xf32> -> vector<8x128xf32>
    %6 = vector.broadcast %4 : vector<1x128xf32> to vector<8x128xf32>
    %7 = arith.addf %5, %6 : vector<8x128xf32>
    %cst_9 = arith.constant 0.000000e+00 : f32
    %8 = vector.broadcast %cst_9 : f32 to vector<8x32xf32>
    %cst_10 = arith.constant 0.000000e+00 : f32
    %9 = vector.broadcast %cst_10 : f32 to vector<8x32xf32>
    %10 = arith.addf %8, %1 : vector<8x32xf32>
    %cst_11 = arith.constant dense<0.000000e+00> : vector<8x16xf32>
    %11 = tpu.matmul %10, %0, %cst_11 {dimension_numbers = #tpu.dot_dimension_numbers<[1], [1], [0], [0], [0, 0, 1, 0], [], []>} : vector<8x32xf32>, vector<16x32xf32>, vector<8x16xf32> -> vector<8x16xf32>
    %cst_12 = arith.constant dense<0xFF800000> : vector<8xf32>
    %12 = vector.multi_reduction <maximumf>, %11, %cst_12 [1] : vector<8x16xf32> to vector<8xf32>
    %13 = vector.shape_cast %12 : vector<8xf32> to vector<8x1xf32>
    %14 = vector.broadcast %13 : vector<8x1xf32> to vector<8x16xf32>
    %15 = arith.subf %11, %14 : vector<8x16xf32>
    %16 = math.exp %15 : vector<8x16xf32>
    %cst_13 = arith.constant dense<0.000000e+00> : vector<8xf32>
    %17 = vector.multi_reduction <add>, %16, %cst_13 [1] : vector<8x16xf32> to vector<8xf32>
    %18 = vector.shape_cast %17 : vector<8xf32> to vector<8x1xf32>
    %19 = vector.broadcast %18 : vector<8x1xf32> to vector<8x16xf32>
    %20 = arith.divf %16, %19 : vector<8x16xf32>
    %cst_14 = arith.constant dense<0.000000e+00> : vector<8x32xf32>
    %21 = tpu.matmul %20, %0, %cst_14 {dimension_numbers = #tpu.dot_dimension_numbers<[1], [0], [0], [1], [0, 0, 1, 1], [], []>} : vector<8x16xf32>, vector<16x32xf32>, vector<8x32xf32> -> vector<8x32xf32>
    %22 = arith.addf %10, %21 : vector<8x32xf32>
    %cst_15 = arith.constant dense<0.000000e+00> : vector<8x128xf32>
    %23 = tpu.matmul %22, %3, %cst_15 {dimension_numbers = #tpu.dot_dimension_numbers<[1], [1], [0], [0], [0, 0, 1, 0], [], []>} : vector<8x32xf32>, vector<128x32xf32>, vector<8x128xf32> -> vector<8x128xf32>
    %24 = arith.addf %7, %23 : vector<8x128xf32>
    %25 = vector.extract_strided_slice %24 {offsets = [0, 0], sizes = [8, 32], strides = [1, 1]} : vector<8x128xf32> to vector<8x32xf32>
    %26 = arith.negf %25 : vector<8x32xf32>
    %27 = math.exp %26 : vector<8x32xf32>
    %cst_16 = arith.constant 1.000000e+00 : f32
    %28 = vector.broadcast %cst_16 : f32 to vector<8x32xf32>
    %29 = arith.addf %28, %27 : vector<8x32xf32>
    %30 = arith.divf %28, %29 : vector<8x32xf32>
    %31 = vector.extract_strided_slice %24 {offsets = [0, 32], sizes = [8, 32], strides = [1, 1]} : vector<8x128xf32> to vector<8x32xf32>
    %32 = arith.negf %31 : vector<8x32xf32>
    %33 = math.exp %32 : vector<8x32xf32>
    %cst_17 = arith.constant 1.000000e+00 : f32
    %34 = vector.broadcast %cst_17 : f32 to vector<8x32xf32>
    %35 = arith.addf %34, %33 : vector<8x32xf32>
    %36 = arith.divf %34, %35 : vector<8x32xf32>
    %37 = vector.extract_strided_slice %24 {offsets = [0, 64], sizes = [8, 32], strides = [1, 1]} : vector<8x128xf32> to vector<8x32xf32>
    %38 = math.tanh %37 : vector<8x32xf32>
    %39 = vector.extract_strided_slice %24 {offsets = [0, 96], sizes = [8, 32], strides = [1, 1]} : vector<8x128xf32> to vector<8x32xf32>
    %40 = arith.negf %39 : vector<8x32xf32>
    %41 = math.exp %40 : vector<8x32xf32>
    %cst_18 = arith.constant 1.000000e+00 : f32
    %42 = vector.broadcast %cst_18 : f32 to vector<8x32xf32>
    %43 = arith.addf %42, %41 : vector<8x32xf32>
    %44 = arith.divf %42, %43 : vector<8x32xf32>
    %45 = arith.mulf %36, %9 : vector<8x32xf32>
    %46 = arith.mulf %30, %38 : vector<8x32xf32>
    %47 = arith.addf %45, %46 : vector<8x32xf32>
    %48 = math.tanh %47 : vector<8x32xf32>
    %49 = arith.mulf %44, %48 : vector<8x32xf32>
    %50 = arith.addf %49, %1 : vector<8x32xf32>
    %cst_19 = arith.constant dense<0.000000e+00> : vector<8x16xf32>
    %51 = tpu.matmul %50, %0, %cst_19 {dimension_numbers = #tpu.dot_dimension_numbers<[1], [1], [0], [0], [0, 0, 1, 0], [], []>} : vector<8x32xf32>, vector<16x32xf32>, vector<8x16xf32> -> vector<8x16xf32>
    %cst_20 = arith.constant dense<0xFF800000> : vector<8xf32>
    %52 = vector.multi_reduction <maximumf>, %51, %cst_20 [1] : vector<8x16xf32> to vector<8xf32>
    %53 = vector.shape_cast %52 : vector<8xf32> to vector<8x1xf32>
    %54 = vector.broadcast %53 : vector<8x1xf32> to vector<8x16xf32>
    %55 = arith.subf %51, %54 : vector<8x16xf32>
    %56 = math.exp %55 : vector<8x16xf32>
    %cst_21 = arith.constant dense<0.000000e+00> : vector<8xf32>
    %57 = vector.multi_reduction <add>, %56, %cst_21 [1] : vector<8x16xf32> to vector<8xf32>
    %58 = vector.shape_cast %57 : vector<8xf32> to vector<8x1xf32>
    %59 = vector.broadcast %58 : vector<8x1xf32> to vector<8x16xf32>
    %60 = arith.divf %56, %59 : vector<8x16xf32>
    %cst_22 = arith.constant dense<0.000000e+00> : vector<8x32xf32>
    %61 = tpu.matmul %60, %0, %cst_22 {dimension_numbers = #tpu.dot_dimension_numbers<[1], [0], [0], [1], [0, 0, 1, 1], [], []>} : vector<8x16xf32>, vector<16x32xf32>, vector<8x32xf32> -> vector<8x32xf32>
    %62 = arith.addf %50, %61 : vector<8x32xf32>
    %cst_23 = arith.constant dense<0.000000e+00> : vector<8x128xf32>
    %63 = tpu.matmul %62, %3, %cst_23 {dimension_numbers = #tpu.dot_dimension_numbers<[1], [1], [0], [0], [0, 0, 1, 0], [], []>} : vector<8x32xf32>, vector<128x32xf32>, vector<8x128xf32> -> vector<8x128xf32>
    %64 = arith.addf %7, %63 : vector<8x128xf32>
    %65 = vector.extract_strided_slice %64 {offsets = [0, 0], sizes = [8, 32], strides = [1, 1]} : vector<8x128xf32> to vector<8x32xf32>
    %66 = arith.negf %65 : vector<8x32xf32>
    %67 = math.exp %66 : vector<8x32xf32>
    %cst_24 = arith.constant 1.000000e+00 : f32
    %68 = vector.broadcast %cst_24 : f32 to vector<8x32xf32>
    %69 = arith.addf %68, %67 : vector<8x32xf32>
    %70 = arith.divf %68, %69 : vector<8x32xf32>
    %71 = vector.extract_strided_slice %64 {offsets = [0, 32], sizes = [8, 32], strides = [1, 1]} : vector<8x128xf32> to vector<8x32xf32>
    %72 = arith.negf %71 : vector<8x32xf32>
    %73 = math.exp %72 : vector<8x32xf32>
    %cst_25 = arith.constant 1.000000e+00 : f32
    %74 = vector.broadcast %cst_25 : f32 to vector<8x32xf32>
    %75 = arith.addf %74, %73 : vector<8x32xf32>
    %76 = arith.divf %74, %75 : vector<8x32xf32>
    %77 = vector.extract_strided_slice %64 {offsets = [0, 64], sizes = [8, 32], strides = [1, 1]} : vector<8x128xf32> to vector<8x32xf32>
    %78 = math.tanh %77 : vector<8x32xf32>
    %79 = vector.extract_strided_slice %64 {offsets = [0, 96], sizes = [8, 32], strides = [1, 1]} : vector<8x128xf32> to vector<8x32xf32>
    %80 = arith.negf %79 : vector<8x32xf32>
    %81 = math.exp %80 : vector<8x32xf32>
    %cst_26 = arith.constant 1.000000e+00 : f32
    %82 = vector.broadcast %cst_26 : f32 to vector<8x32xf32>
    %83 = arith.addf %82, %81 : vector<8x32xf32>
    %84 = arith.divf %82, %83 : vector<8x32xf32>
    %85 = arith.mulf %76, %47 : vector<8x32xf32>
    %86 = arith.mulf %70, %78 : vector<8x32xf32>
    %87 = arith.addf %85, %86 : vector<8x32xf32>
    %88 = math.tanh %87 : vector<8x32xf32>
    %89 = arith.mulf %84, %88 : vector<8x32xf32>
    %90 = arith.addf %89, %1 : vector<8x32xf32>
    %c0_27 = arith.constant 0 : index
    %c0_28 = arith.constant 0 : index
    %91 = vector.load %arg6[%c0_27, %c0_28] : memref<8x32xf32, #tpu.memory_space<vmem>>, vector<8x32xf32>
    tpu.vector_store %arg6[%c0_27, %c0_28], %90 {strides = array<i32>} : memref<8x32xf32, #tpu.memory_space<vmem>>, vector<8x32xf32>,
    return
  }
  func.func @transform_0(%arg0: i32) -> (i32, i32) {
    %c0_i32 = arith.constant 0 : i32
    %c0_i32_0 = arith.constant 0 : i32
    %c0_i32_1 = arith.constant 0 : i32
    return %c0_i32, %c0_i32_0 : i32, i32
  }
  func.func @transform_1(%arg0: i32) -> (i32, i32) {
    %c0_i32 = arith.constant 0 : i32
    %c0_i32_0 = arith.constant 0 : i32
    return %arg0, %c0_i32 : i32, i32
  }
  func.func @transform_2(%arg0: i32) -> (i32, i32) {
    %c0_i32 = arith.constant 0 : i32
    %c0_i32_0 = arith.constant 0 : i32
    %c0_i32_1 = arith.constant 0 : i32
    return %c0_i32, %c0_i32_0 : i32, i32
  }
  func.func @transform_3(%arg0: i32) -> (i32, i32) {
    %c0_i32 = arith.constant 0 : i32
    %c0_i32_0 = arith.constant 0 : i32
    %c0_i32_1 = arith.constant 0 : i32
    return %c0_i32, %c0_i32_0 : i32, i32
  }
  func.func @transform_4(%arg0: i32) -> (i32, i32) {
    %c0_i32 = arith.constant 0 : i32
    %c0_i32_0 = arith.constant 0 : i32
    %c0_i32_1 = arith.constant 0 : i32
    return %c0_i32, %c0_i32_0 : i32, i32
  }
  func.func @transform_5(%arg0: i32) -> (i32, i32) {
    %c0_i32 = arith.constant 0 : i32
    %c0_i32_0 = arith.constant 0 : i32
    return %arg0, %c0_i32 : i32, i32
  }
}

</mosaic_0001>

<bundles_post_ra>
// kernel: tpu_custom_call.1
= control target key start
LH: loop header
LB: loop body
LE: loop exit
PB: predicated region body
PF: predicated region fallthrough
CT: control target
= control target key end

     0   :  { %vm63_vm0 = vcmask 261120   ;;  %v1095_v1 = vmov 0.0   ;;  %vm1096_vm1 = vmmov 0   ;;  %s1409_s0 = inlined_call_operand.vmem [shape: f32[16,32], index: 0, kind: input, shape index: {}]   ;;  %s1410_s1 = inlined_call_operand.vmem [shape: f32[8,32], index: 1, kind: input, shape index: {}]   ;;  %s1411_s2 = inlined_call_operand.vmem [shape: f32[128,32], index: 2, kind: input, shape index: {}]   ;;  %s1412_s3 = inlined_call_operand.vmem [shape: f32[128,32], index: 3, kind: input, shape index: {}]   ;;  %s1413_s4 = inlined_call_operand.vmem [shape: f32[1,128], index: 4, kind: input, shape index: {}]   ;;  %s1414_s5 = inlined_call_operand.hbm [shape: f32[8,32], index: 5, kind: output, shape index: {}]  }
   0x1   :  { %v1134_v0 = vld [vmem:[%s1409_s0 + $0x8] sm:$0xff]  ;;  %945 = vmatprep.subr.mxu1 %v1095_v1  ;;  %949 = vmatprep.mubr.msk.f32.mxu1 %vm1096_vm1, %v1095_v1 }
   0x2   :  { %10 = vsyncpa [#allocation3], 0  ;;  %946 = vmatpush3.xpose.msk.msra.mxu1 %vm63_vm0, %v1134_v0  ;;  %910 = vmatprep.subr.mxu0 %v1095_v1  ;;  %v1146_v2 = vld [vmem:[%s1409_s0] sm:$0xff]  ;;  %vm265_vm2 = vcmask 130048   ;;  %v39_v12 = vld [vmem:[%s1411_s2 + $0x78] sm:$0xff]  ;;  %s1097_s6 = smov 64  }
   0x3   :  { %947 = vmatprep.subr.mxu1 %v1095_v1  ;;  %942 = vmatprep.mubr.msk.f32.mxu0 %vm1096_vm1, %v1095_v1  ;;  %v1155_v3 = vld [vmem:[%s1410_s1] sm:$0xff]  ;;  %v38_v13 = vld [vmem:[%s1411_s2 + $0x70] sm:$0xff]  ;;  %v37_v14 = vld [vmem:[%s1411_s2 + $0x68] sm:$0xff]  ;;  %s1098_s7 = smov 32   ;;  %s1100_s8 = smov [#allocation2]  }
   0x4   :  { %911 = vmatpush3.xpose.msk.msra.mxu0 %vm63_vm0, %v39_v12  ;;  %v36_v15 = vld [vmem:[%s1411_s2 + $0x60] sm:$0xff]  ;;  %v35_v16 = vld [vmem:[%s1411_s2 + $0x58] sm:$0xff]  ;;  %v34_v17 = vld [vmem:[%s1411_s2 + $0x50] sm:$0xff]  ;;  %s777_s9 = sshll.u32 %s1100_s8, 4  ;;  %s778_s9 = int_to_ptr.vmem [resolvable:$true] %s777_s9 }
   0x5   :  { %912 = vmatprep.subr.mxu0 %v1095_v1  ;;  %v33_v18 = vld [vmem:[%s1411_s2 + $0x48] sm:$0xff]  ;;  %v32_v19 = vld [vmem:[%s1411_s2 + $0x40] sm:$0xff]  ;;  %v31_v20 = vld [vmem:[%s1411_s2 + $0x38] sm:$0xff]  ;;  %s1073_s10 = scalar_lea.vmem %s778_s9, 128  ;;  %p1078_p1 = scmp.lt.s32.totalorder %s778_s9, %s778_s9 }
   0x6   :  { %948 = vmatpush3.xpose.msk.msra.mxu1 %vm63_vm0, %v1146_v2  ;;  %v30_v21 = vld [vmem:[%s1411_s2 + $0x30] sm:$0xff]  ;;  %v29_v22 = vld [vmem:[%s1411_s2 + $0x28] sm:$0xff]  ;;  %v28_v23 = vld [vmem:[%s1411_s2 + $0x20] sm:$0xff]  ;;  %p1074_p0 = scmp.ne.s32.totalorder %s778_s9, %s1073_s10  ;;  %p1079_p2 = scmp.lt.s32.totalorder %s1073_s10, %s1073_s10 }
   0x7   :  { %952 = vmatprep.subr.mxu1 %v1095_v1  ;;  %v27_v24 = vld [vmem:[%s1411_s2 + $0x18] sm:$0xff]  ;;  %v26_v25 = vld [vmem:[%s1411_s2 + $0x10] sm:$0xff]  ;;  %v25_v26 = vld [vmem:[%s1411_s2 + $0x8] sm:$0xff] }
   0x8   :  { %913 = vmatpush3.xpose.msk.msra.mxu0 %vm63_vm0, %v38_v13  ;;  %v24_v27 = vld [vmem:[%s1411_s2] sm:$0xff]  ;;  %v55_v28 = vld [vmem:[%s1412_s3 + $0x78] sm:$0xff]  ;;  %v54_v29 = vld [vmem:[%s1412_s3 + $0x70] sm:$0xff]  ;;  %p1080_p3 = por %p1079_p2, %p1078_p1 }
   0x9   :  { %950 = vmatmul.mubr.msk.f32.vlgmr.msra.gmra.mxu1 %vm63_vm0, %v1155_v3  ;;  %914 = vmatprep.subr.mxu0 %v1095_v1  ;;  %v53_v30 = vld [vmem:[%s1412_s3 + $0x68] sm:$0xff]  ;;  %v52_v31 = vld [vmem:[%s1412_s3 + $0x60] sm:$0xff]  ;;  %v51_v32 = vld [vmem:[%s1412_s3 + $0x58] sm:$0xff] }
   0xa   :  { %953 = vmatpush3.msra.mxu1 %v1134_v0  ;;  %956 = vmatprep.mubr.msk.f32.mxu1 %vm1096_vm1, %v1095_v1  ;;  %v50_v33 = vld [vmem:[%s1412_s3 + $0x50] sm:$0xff]  ;;  %v49_v34 = vld [vmem:[%s1412_s3 + $0x48] sm:$0xff]  ;;  %v48_v35 = vld [vmem:[%s1412_s3 + $0x40] sm:$0xff]  ;;  %p1081_p4 = pnand %p1080_p3, %p1074_p0 }
   0xb   :  { %954 = vmatprep.subr.mxu1 %v1095_v1  ;;  %v47_v36 = vld [vmem:[%s1412_s3 + $0x38] sm:$0xff]  ;;  %v46_v37 = vld [vmem:[%s1412_s3 + $0x30] sm:$0xff]  ;;  %v45_v38 = vld [vmem:[%s1412_s3 + $0x28] sm:$0xff] }
   0xc   :  { %955 = vmatpush3.msra.mxu1 %v1146_v2  ;;  %915 = vmatpush3.xpose.msk.msra.mxu0 %vm63_vm0, %v37_v14  ;;  %v44_v39 = vld [vmem:[%s1412_s3 + $0x20] sm:$0xff]  ;;  %v43_v41 = vld [vmem:[%s1412_s3 + $0x18] sm:$0xff]  ;;  %v42_v42 = vld [vmem:[%s1412_s3 + $0x10] sm:$0xff] }
   0xd   :  { %959 = vmatprep.subr.mxu1 %v1095_v1  ;;  %916 = vmatprep.subr.mxu0 %v1095_v1  ;;  %v41_v43 = vld [vmem:[%s1412_s3 + $0x8] sm:$0xff]  ;;  %v40_v46 = vld [vmem:[%s1412_s3] sm:$0xff] }
   0xe   :  { %v785_v52 = vld [vmem:[%s1413_s4] ss:$0 sm:$0xff]  ;;  %s1099_s4 = smov 96  }
  0x10   :  { %917 = vmatpush3.xpose.msk.msra.mxu0 %vm63_vm0, %v36_v15 }
  0x11   :  { %918 = vmatprep.subr.mxu0 %v1095_v1 }
  0x14   :  { %919 = vmatpush3.xpose.msk.msra.mxu0 %vm63_vm0, %v35_v16 }
  0x15   :  { %920 = vmatprep.subr.mxu0 %v1095_v1 }
  0x18   :  { %921 = vmatpush3.xpose.msk.msra.mxu0 %vm63_vm0, %v34_v17 }
  0x19   :  { %922 = vmatprep.subr.mxu0 %v1095_v1 }
  0x1c   :  { %923 = vmatpush3.xpose.msk.msra.mxu0 %vm63_vm0, %v33_v18 }
  0x1d   :  { %924 = vmatprep.subr.mxu0 %v1095_v1 }
  0x20   :  { %925 = vmatpush3.xpose.msk.msra.mxu0 %vm63_vm0, %v32_v19 }
  0x21   :  { %926 = vmatprep.subr.mxu0 %v1095_v1 }
  0x24   :  { %927 = vmatpush3.xpose.msk.msra.mxu0 %vm63_vm0, %v31_v20 }
  0x25   :  { %928 = vmatprep.subr.mxu0 %v1095_v1 }
  0x28   :  { %929 = vmatpush3.xpose.msk.msra.mxu0 %vm63_vm0, %v30_v21 }
  0x29   :  { %930 = vmatprep.subr.mxu0 %v1095_v1 }
  0x2c   :  { %931 = vmatpush3.xpose.msk.msra.mxu0 %vm63_vm0, %v29_v22 }
  0x2d   :  { %932 = vmatprep.subr.mxu0 %v1095_v1 }
  0x30   :  { %933 = vmatpush3.xpose.msk.msra.mxu0 %vm63_vm0, %v28_v23 }
  0x31   :  { %934 = vmatprep.subr.mxu0 %v1095_v1 }
  0x34   :  { %935 = vmatpush3.xpose.msk.msra.mxu0 %vm63_vm0, %v27_v24 }
  0x35   :  { %936 = vmatprep.subr.mxu0 %v1095_v1 }
  0x38   :  { %937 = vmatpush3.xpose.msk.msra.mxu0 %vm63_vm0, %v26_v25 }
  0x39   :  { %938 = vmatprep.subr.mxu0 %v1095_v1 }
  0x3c   :  { %939 = vmatpush3.xpose.msk.msra.mxu0 %vm63_vm0, %v25_v26 }
  0x3d   :  { %940 = vmatprep.subr.mxu0 %v1095_v1 }
  0x40   :  { %941 = vmatpush3.xpose.msk.msra.mxu0 %vm63_vm0, %v24_v27 }
  0x41   :  { %1008 = vmatprep.subr.mxu0 %v1095_v1 }
  0x43   :  { %943 = vmatmul.mubr.msk.f32.vlgmr.msra.gmra.mxu0 %vm63_vm0, %v1155_v3 }
  0x44   :  { %1009 = vmatpush3.xpose.msk.msra.mxu0 %vm63_vm0, %v55_v28  ;;  %1040 = vmatprep.mubr.msk.f32.mxu0 %vm1096_vm1, %v1095_v1 }
  0x45   :  { %1010 = vmatprep.subr.mxu0 %v1095_v1 }
  0x48   :  { %1011 = vmatpush3.xpose.msk.msra.mxu0 %vm63_vm0, %v54_v29 }
  0x49   :  { %1012 = vmatprep.subr.mxu0 %v1095_v1 }
  0x4c   :  { %1013 = vmatpush3.xpose.msk.msra.mxu0 %vm63_vm0, %v53_v30 }
  0x4d   :  { %1014 = vmatprep.subr.mxu0 %v1095_v1 }
  0x50   :  { %1015 = vmatpush3.xpose.msk.msra.mxu0 %vm63_vm0, %v52_v31 }
  0x51   :  { %1016 = vmatprep.subr.mxu0 %v1095_v1 }
  0x54   :  { %1017 = vmatpush3.xpose.msk.msra.mxu0 %vm63_vm0, %v51_v32 }
  0x55   :  { %1018 = vmatprep.subr.mxu0 %v1095_v1 }
  0x58   :  { %1019 = vmatpush3.xpose.msk.msra.mxu0 %vm63_vm0, %v50_v33 }
  0x59   :  { %1020 = vmatprep.subr.mxu0 %v1095_v1 }
  0x5c   :  { %1021 = vmatpush3.xpose.msk.msra.mxu0 %vm63_vm0, %v49_v34 }
  0x5d   :  { %1022 = vmatprep.subr.mxu0 %v1095_v1 }
  0x60   :  { %1023 = vmatpush3.xpose.msk.msra.mxu0 %vm63_vm0, %v48_v35 }
  0x61   :  { %1024 = vmatprep.subr.mxu0 %v1095_v1 }
  0x64   :  { %1025 = vmatpush3.xpose.msk.msra.mxu0 %vm63_vm0, %v47_v36 }
  0x65   :  { %1026 = vmatprep.subr.mxu0 %v1095_v1 }
  0x68   :  { %1027 = vmatpush3.xpose.msk.msra.mxu0 %vm63_vm0, %v46_v37 }
  0x69   :  { %1028 = vmatprep.subr.mxu0 %v1095_v1 }
  0x6c   :  { %1029 = vmatpush3.xpose.msk.msra.mxu0 %vm63_vm0, %v45_v38 }
  0x6d   :  { %1030 = vmatprep.subr.mxu0 %v1095_v1 }
  0x70   :  { %1031 = vmatpush3.xpose.msk.msra.mxu0 %vm63_vm0, %v44_v39 }
  0x71   :  { %1032 = vmatprep.subr.mxu0 %v1095_v1 }
  0x74   :  { %1033 = vmatpush3.xpose.msk.msra.mxu0 %vm63_vm0, %v43_v41 }
  0x75   :  { %1034 = vmatprep.subr.mxu0 %v1095_v1 }
  0x78   :  { %1035 = vmatpush3.xpose.msk.msra.mxu0 %vm63_vm0, %v42_v42 }
  0x79   :  { %1036 = vmatprep.subr.mxu0 %v1095_v1 }
  0x7c   :  { %1037 = vmatpush3.xpose.msk.msra.mxu0 %vm63_vm0, %v41_v43 }
  0x7d   :  { %1038 = vmatprep.subr.mxu0 %v1095_v1 }
  0x80   :  { %1039 = vmatpush3.xpose.msk.msra.mxu0 %vm63_vm0, %v40_v46 }
  0xc9   :  { %v261_v4 = vpop.f32.mrf.mxu1 }
  0xca   :  { %v266_v5 = vsel %vm265_vm2, %v261_v4, -inf }
  0xcb   :  { %267 = vmax.xlane.f32.xlu0 %v266_v5  ;;  %v951_v6 = vpop.f32.mrf.mxu1 }
 0x103   :  { %v181_v47 = vpop.f32.mrf.mxu0 }
 0x104   :  { %v182_v53 = vadd.f32 %v785_v52, %v181_v47 }
 0x105   :  { %v944_v48 = vpop.f32.mrf.mxu0 }
 0x154   :  { %v268_v7 = vpop.xlane.xlu0 %267 }
 0x155   :  { %v269_v8 = vsub.f32 %v261_v4, %v268_v7 }
 0x157   :  { %v270_v9 = vmul.f32 1.442695, %v269_v8 }
 0x159   :  { %1049 = vpow2.f32 %v270_v9 }
 0x166   :  { %v1167_v10 = vpop.eup %1049 }
 0x167   :  { %v272_v11 = vsel %vm265_vm2, %v1167_v10, 0.0 }
 0x168   :  { %273 = vadd.xlane.f32.xlu0 %v272_v11 }
 0x1f1   :  { %v274_v40 = vpop.xlane.xlu0 %273 }
 0x1f2   :  { %1051 = vrcp.f32 %v274_v40 }
 0x1ff   :  { %v1052_v44 = vpop.eup %1051 }
 0x200   :  { %v276_v45 = vmul.f32 %v1052_v44, %v1167_v10 }
 0x202   :  { %957 = vmatmul.mubr.msk.f32.vlgmr.msra.gmra.mxu1 %vm265_vm2, %v276_v45 }
 0x203   :  { %960 = vmatpush3.xpose.msk.msra.mxu1 %vm63_vm0, %v55_v28  ;;  %991 = vmatprep.mubr.msk.f32.mxu1 %vm1096_vm1, %v1095_v1 }
 0x204   :  { %961 = vmatprep.subr.mxu1 %v1095_v1 }
 0x207   :  { %962 = vmatpush3.xpose.msk.msra.mxu1 %vm63_vm0, %v54_v29 }
 0x208   :  { %963 = vmatprep.subr.mxu1 %v1095_v1 }
 0x20b   :  { %964 = vmatpush3.xpose.msk.msra.mxu1 %vm63_vm0, %v53_v30 }
 0x20c   :  { %965 = vmatprep.subr.mxu1 %v1095_v1 }
 0x20f   :  { %966 = vmatpush3.xpose.msk.msra.mxu1 %vm63_vm0, %v52_v31 }
 0x210   :  { %967 = vmatprep.subr.mxu1 %v1095_v1 }
 0x213   :  { %968 = vmatpush3.xpose.msk.msra.mxu1 %vm63_vm0, %v51_v32 }
 0x214   :  { %969 = vmatprep.subr.mxu1 %v1095_v1 }
 0x217   :  { %970 = vmatpush3.xpose.msk.msra.mxu1 %vm63_vm0, %v50_v33 }
 0x218   :  { %971 = vmatprep.subr.mxu1 %v1095_v1 }
 0x21b   :  { %972 = vmatpush3.xpose.msk.msra.mxu1 %vm63_vm0, %v49_v34 }
 0x21c   :  { %973 = vmatprep.subr.mxu1 %v1095_v1 }
 0x21f   :  { %974 = vmatpush3.xpose.msk.msra.mxu1 %vm63_vm0, %v48_v35 }
 0x220   :  { %975 = vmatprep.subr.mxu1 %v1095_v1 }
 0x223   :  { %976 = vmatpush3.xpose.msk.msra.mxu1 %vm63_vm0, %v47_v36 }
 0x224   :  { %977 = vmatprep.subr.mxu1 %v1095_v1 }
 0x227   :  { %978 = vmatpush3.xpose.msk.msra.mxu1 %vm63_vm0, %v46_v37 }
 0x228   :  { %979 = vmatprep.subr.mxu1 %v1095_v1 }
 0x22b   :  { %980 = vmatpush3.xpose.msk.msra.mxu1 %vm63_vm0, %v45_v38 }
 0x22c   :  { %981 = vmatprep.subr.mxu1 %v1095_v1 }
 0x22f   :  { %982 = vmatpush3.xpose.msk.msra.mxu1 %vm63_vm0, %v44_v39 }
 0x230   :  { %983 = vmatprep.subr.mxu1 %v1095_v1 }
 0x233   :  { %984 = vmatpush3.xpose.msk.msra.mxu1 %vm63_vm0, %v43_v41 }
 0x234   :  { %985 = vmatprep.subr.mxu1 %v1095_v1 }
 0x237   :  { %986 = vmatpush3.xpose.msk.msra.mxu1 %vm63_vm0, %v42_v42 }
 0x238   :  { %987 = vmatprep.subr.mxu1 %v1095_v1 }
 0x23b   :  { %988 = vmatpush3.xpose.msk.msra.mxu1 %vm63_vm0, %v41_v43 }
 0x23c   :  { %989 = vmatprep.subr.mxu1 %v1095_v1 }
 0x23f   :  { %990 = vmatpush3.xpose.msk.msra.mxu1 %vm63_vm0, %v40_v46 }
 0x240   :  { %994 = vmatprep.subr.mxu1 %v1095_v1 }
 0x2c2   :  { %v346_v49 = vpop.f32.mrf.mxu1 }
 0x2c3   :  { %v350_v50 = vadd.f32 %v346_v49, %v1155_v3 }
 0x2c4   :  { %v958_v51 = vpop.f32.mrf.mxu1 }
 0x2c5   :  { %992 = vmatmul.mubr.msk.f32.vlgmr.msra.gmra.mxu1 %vm63_vm0, %v350_v50 }
 0x2c6   :  { %995 = vmatpush3.xpose.msk.msra.mxu1 %vm63_vm0, %v1134_v0  ;;  %998 = vmatprep.mubr.msk.f32.mxu1 %vm1096_vm1, %v1095_v1 }
 0x2c7   :  { %996 = vmatprep.subr.mxu1 %v1095_v1 }
 0x2ca   :  { %997 = vmatpush3.xpose.msk.msra.mxu1 %vm63_vm0, %v1146_v2 }
 0x2cb   :  { %1001 = vmatprep.subr.mxu1 %v1095_v1 }
 0x385   :  { %v468_v54 = vpop.f32.mrf.mxu1 }
 0x386   :  { %v472_v55 = vadd.f32 %v468_v54, %v182_v53 }
 0x387   :  { %v993_v56 = vpop.f32.mrf.mxu1 }
 0x388   :  { %1053 = vtanh.f32 %v472_v55  ;;  %v824_v58 = vmul.f32 -1.442695, %v472_v55 }
 0x38a   :  { %1055 = vpow2.f32 %v824_v58 }
 0x395   :  { %v1054_v57 = vpop.eup %1053 }
 0x396   :  { %482 = vrot.lane.b32.xlu1 %v1054_v57, %s1097_s6 }
 0x397   :  { %v1056_v59 = vpop.eup %1055 }
 0x398   :  { %v476_v60 = vadd.f32 1.0, %v1056_v59 }
 0x39a   :  { %1057 = vrcp.f32 %v476_v60 }
 0x3a7   :  { %v1058_v61 = vpop.eup %1057 }
 0x3a8   :  { %v480_v4 = vmul.f32 0.0, %v1058_v61 }
 0x408   :  { %v483_v62 = vpop.permute.xlu1 %482 }
 0x409   :  { %v485_v63 = vmul.f32 %v1058_v61, %v483_v62 }
 0x40b   :  { %487 = vrot.lane.b32.xlu1 %v485_v63, %s1098_s7 }
 0x40f   :  { %497 = vrot.lane.b32.xlu1 %v1155_v3, %s1099_s4 }
 0x47d   :  { %v488_v5 = vpop.permute.xlu1 %487 }
 0x47e   :  { %v490_v6 = vadd.f32 %v488_v5, %v480_v4 }
 0x480   :  { %1059 = vtanh.f32 %v490_v6 }
 0x481   :  { %v498_v9 = vpop.permute.xlu1 %497 }
 0x48d   :  { %v1060_v7 = vpop.eup %1059 }
 0x48e   :  { %493 = vrot.lane.b32.xlu0 %v1060_v7, %s1097_s6 }
 0x500   :  { %v494_v8 = vpop.permute.xlu0 %493 }
 0x501   :  { %v496_v10 = vmul.f32 %v1058_v61, %v494_v8 }
 0x503   :  { %v500_v11 = vadd.f32 %v498_v9, %v496_v10 }
 0x505   :  { %502 = vrot.lane.b32.xlu1 %v500_v11, %s1098_s7 }
 0x577   :  { %v503_v12 = vpop.permute.xlu1 %502 }
 0x578   :  { %999 = vmatmul.mubr.msk.f32.vlgmr.msra.gmra.mxu1 %vm63_vm0, %v503_v12 }
 0x579   :  { %1002 = vmatpush3.msra.mxu1 %v1134_v0  ;;  %1005 = vmatprep.mubr.msk.f32.mxu1 %vm1096_vm1, %v1095_v1 }
 0x57a   :  { %1003 = vmatprep.subr.mxu1 %v1095_v1 }
 0x57b   :  { %1004 = vmatpush3.msra.mxu1 %v1146_v2 }
 0x638   :  { %v572_v3 = vpop.f32.mrf.mxu1 }
 0x639   :  { %v576_v13 = vsel %vm265_vm2, %v572_v3, -inf }
 0x63a   :  { %577 = vmax.xlane.f32.xlu1 %v576_v13  ;;  %v1000_v14 = vpop.f32.mrf.mxu1 }
 0x6c3   :  { %v578_v15 = vpop.xlane.xlu1 %577 }
 0x6c4   :  { %v579_v16 = vsub.f32 %v572_v3, %v578_v15 }
 0x6c6   :  { %v580_v17 = vmul.f32 1.442695, %v579_v16 }
 0x6c8   :  { %1061 = vpow2.f32 %v580_v17 }
 0x6d5   :  { %v1062_v18 = vpop.eup %1061 }
 0x6d6   :  { %v582_v19 = vsel %vm265_vm2, %v1062_v18, 0.0 }
 0x6d7   :  { %583 = vadd.xlane.f32.xlu0 %v582_v19 }
 0x760   :  { %v584_v0 = vpop.xlane.xlu0 %583 }
 0x761   :  { %1063 = vrcp.f32 %v584_v0 }
 0x76e   :  { %v1064_v20 = vpop.eup %1063 }
 0x76f   :  { %v586_v21 = vmul.f32 %v1064_v20, %v1062_v18 }
 0x771   :  { %1006 = vmatmul.mubr.msk.f32.vlgmr.msra.gmra.mxu1 %vm265_vm2, %v586_v21 }
 0x831   :  { %v656_v1 = vpop.f32.mrf.mxu1 }
 0x832   :  { %661 = vrot.lane.b32.xlu1 %v656_v1, %s1099_s4 }
 0x833   :  { %v1007_v2 = vpop.f32.mrf.mxu1 }
 0x8a4   :  { %v662_v22 = vpop.permute.xlu1 %661 }
 0x8a5   :  { %v664_v23 = vadd.f32 %v662_v22, %v500_v11 }
 0x8a7   :  { %666 = vrot.lane.b32.xlu0 %v664_v23, %s1098_s7 }
 0x919   :  { %v667_v24 = vpop.permute.xlu0 %666 }
 0x91a   :  { %1041 = vmatmul.mubr.msk.f32.vlgmr.msra.gmra.mxu0 %vm63_vm0, %v667_v24 }
 0x9da   :  { %v736_v25 = vpop.f32.mrf.mxu0 }
 0x9db   :  { %v740_v26 = vadd.f32 %v736_v25, %v182_v53 }
 0x9dc   :  { %v1042_v27 = vpop.f32.mrf.mxu0 }
 0x9dd   :  { %1065 = vtanh.f32 %v740_v26  ;;  %v846_v29 = vmul.f32 -1.442695, %v740_v26 }
 0x9df   :  { %1067 = vpow2.f32 %v846_v29 }
 0x9ea   :  { %v1066_v28 = vpop.eup %1065 }
 0x9eb   :  { %750 = vrot.lane.b32.xlu1 %v1066_v28, %s1097_s6 }
 0x9ec   :  { %v1068_v30 = vpop.eup %1067 }
 0x9ed   :  { %v744_v31 = vadd.f32 1.0, %v1068_v30 }
 0x9ef   :  { %1069 = vrcp.f32 %v744_v31 }
 0x9fc   :  { %v1070_v32 = vpop.eup %1069 }
 0x9fd   :  { %v748_v35 = vmul.f32 %v1070_v32, %v490_v6 }
 0xa5d   :  { %v751_v33 = vpop.permute.xlu1 %750 }
 0xa5e   :  { %v753_v34 = vmul.f32 %v1070_v32, %v751_v33 }
 0xa60   :  { %755 = vrot.lane.b32.xlu1 %v753_v34, %s1098_s7 }
 0xad2   :  { %v756_v36 = vpop.permute.xlu1 %755 }
 0xad3   :  { %v758_v37 = vadd.f32 %v756_v36, %v748_v35 }
 0xad5   :  { %1071 = vtanh.f32 %v758_v37 }
 0xae2   :  { %v1072_v38 = vpop.eup %1071 }
 0xae3   :  { %761 = vrot.lane.b32.xlu1 %v1072_v38, %s1097_s6 }
 0xb55   :  { %v762_v39 = vpop.permute.xlu1 %761 }
 0xb56   :  { %v764_v40 = vmul.f32 %v1070_v32, %v762_v39 }
 0xb58   :  { %v765_v41 = vadd.f32 %v764_v40, %v498_v9 }
 0xb5a   :  { %767 = vrot.lane.b32.xlu1 %v765_v41, %s1098_s7 }
 0xbcc   :  { %v768_v42 = vpop.permute.xlu1 %767 }
 0xbcd   :  { %770 = vst.msk [vmem:[#allocation2] sm:$0xff] %vm63_vm0, %v768_v42 }
 0xbce   :  { %1084 = shalt.err (!%p1081_p4)
}
 0xbcf   :  { %780 = dma.vmem_to_hbm [thread:$0]  %s778_s9, 128, %s1414_s5, [#allocation3]  }
 0xbd0   :  { %1093 = dma.done.wait [#allocation3], 128  }
 0xbd1   :  { %1094 = vsyncadd [#allocation3], 4294967168 }
 0xbd2   :  { %784 = vsyncpa [#allocation3], 1 }

</bundles_post_ra>
